<compile_context>
chip_gen: v7x
topology: tpu7x:2x2x1
jax: 0.10.0
libtpu: 0.0.40
codegen_flags: <defaults>
</compile_context>

<pallas_src>
import jax
import jax.numpy as jnp
from jax.experimental import pallas as pl
from jax.experimental.pallas import tpu as pltpu

_BN_EPS = 1e-5
_ROW_TILE_CAP = 256     # matmul row tile (per review: v5e/v7x friendly)
_K_TILE = 512           # reduction tile
_AFFINE_ROW_CAP = 1024  # elementwise row tile


# ------------------------------ small helpers ------------------------------ #

def _round_up(x, m):
    return ((x + m - 1) // m) * m


def _pad_rows(a, mp):
    m = a.shape[0]
    if mp == m:
        return a
    return jnp.pad(a, ((0, mp - m), (0, 0)))


# ----------------------------- Pallas kernels ------------------------------ #

def _mm_bn_kernel(p_ref, w_ref, o_ref, s_ref, ss_ref, acc_ref):
    """Row-tile of (tm,K)@(K,C) with fused per-channel sum / sum-of-squares."""
    kk = pl.program_id(1)

    @pl.when(kk == 0)
    def _():
        acc_ref[...] = jnp.zeros_like(acc_ref)

    acc_ref[...] += jnp.dot(p_ref[...], w_ref[...],
                            preferred_element_type=jnp.float32)

    @pl.when(kk == pl.num_programs(1) - 1)
    def _():
        y = acc_ref[...]
        o_ref[...] = y
        # Per-row-tile partial BatchNorm statistics (reduced outside).
        s_ref[...] = jnp.sum(y, axis=0, keepdims=True)[None]
        ss_ref[...] = jnp.sum(y * y, axis=0, keepdims=True)[None]


def _mm_bias_tanh_kernel(p_ref, w_ref, b_ref, o_ref, acc_ref):
    """Row-tile matmul with fused bias + tanh epilogue (final layer)."""
    kk = pl.program_id(1)

    @pl.when(kk == 0)
    def _():
        acc_ref[...] = jnp.zeros_like(acc_ref)

    acc_ref[...] += jnp.dot(p_ref[...], w_ref[...],
                            preferred_element_type=jnp.float32)

    @pl.when(kk == pl.num_programs(1) - 1)
    def _():
        o_ref[...] = jnp.tanh(acc_ref[...] + b_ref[...])


def _affine_relu_kernel(y_ref, scale_ref, shift_ref, o_ref):
    """Fused per-channel affine (BatchNorm) + ReLU."""
    o_ref[...] = jnp.maximum(y_ref[...] * scale_ref[...] + shift_ref[...], 0.0)


# ----------------------------- Pallas wrappers ----------------------------- #

def _matmul_tiling(m, k):
    tm = min(_ROW_TILE_CAP, _round_up(m, 8))
    mp = _round_up(m, tm)
    if k <= _K_TILE:
        tk, kp = k, k
    else:
        tk, kp = _K_TILE, _round_up(k, _K_TILE)
    return tm, mp, tk, kp


def pallas_matmul_bn(patches, w_mat):
    """(M,K)@(K,C) in bf16->f32 with fused per-channel sum / sumsq.

    Returns (y (M,C) f32, col_sum (C,), col_sumsq (C,)).
    """
    m, k = patches.shape
    c = w_mat.shape[1]
    tm, mp, tk, kp = _matmul_tiling(m, k)

    p = _pad_rows(patches.astype(jnp.bfloat16), mp)
    w = w_mat
    if kp != k:
        p = jnp.pad(p, ((0, 0), (0, kp - k)))
        w = jnp.pad(w, ((0, kp - k), (0, 0)))
    w = w.astype(jnp.bfloat16)

    gm, gk = mp // tm, kp // tk
    y, s_parts, ss_parts = pl.pallas_call(
        _mm_bn_kernel,
        out_shape=(jax.ShapeDtypeStruct((mp, c), jnp.float32),
                   jax.ShapeDtypeStruct((gm, 1, c), jnp.float32),
                   jax.ShapeDtypeStruct((gm, 1, c), jnp.float32)),
        grid=(gm, gk),
        in_specs=[pl.BlockSpec((tm, tk), lambda i, j: (i, j)),
                  pl.BlockSpec((tk, c), lambda i, j: (j, 0))],
        out_specs=(pl.BlockSpec((tm, c), lambda i, j: (i, 0)),
                   pl.BlockSpec((1, 1, c), lambda i, j: (i, 0, 0)),
                   pl.BlockSpec((1, 1, c), lambda i, j: (i, 0, 0))),
        scratch_shapes=[pltpu.VMEM((tm, c), jnp.float32)],
        compiler_params=pltpu.CompilerParams(
            dimension_semantics=("parallel", "arbitrary")),
    )(p, w)
    return y[:m], jnp.sum(s_parts, axis=(0, 1)), jnp.sum(ss_parts, axis=(0, 1))


def pallas_matmul_bias_tanh(patches, w_mat, bias):
    """(M,K)@(K,C) + bias, tanh, fused in the matmul epilogue."""
    m, k = patches.shape
    c = w_mat.shape[1]
    tm, mp, tk, kp = _matmul_tiling(m, k)

    p = _pad_rows(patches.astype(jnp.bfloat16), mp)
    w = w_mat
    if kp != k:
        p = jnp.pad(p, ((0, 0), (0, kp - k)))
        w = jnp.pad(w, ((0, kp - k), (0, 0)))
    w = w.astype(jnp.bfloat16)

    gm, gk = mp // tm, kp // tk
    y = pl.pallas_call(
        _mm_bias_tanh_kernel,
        out_shape=jax.ShapeDtypeStruct((mp, c), jnp.float32),
        grid=(gm, gk),
        in_specs=[pl.BlockSpec((tm, tk), lambda i, j: (i, j)),
                  pl.BlockSpec((tk, c), lambda i, j: (j, 0)),
                  pl.BlockSpec((1, c), lambda i, j: (0, 0))],
        out_specs=pl.BlockSpec((tm, c), lambda i, j: (i, 0)),
        scratch_shapes=[pltpu.VMEM((tm, c), jnp.float32)],
        compiler_params=pltpu.CompilerParams(
            dimension_semantics=("parallel", "arbitrary")),
    )(p, w, bias.astype(jnp.float32).reshape(1, c))
    return y[:m]


def _pallas_affine_relu(y, scale, shift):
    m, c = y.shape
    tm = min(_AFFINE_ROW_CAP, _round_up(m, 8))
    mp = _round_up(m, tm)
    yp = _pad_rows(y, mp)
    out = pl.pallas_call(
        _affine_relu_kernel,
        out_shape=jax.ShapeDtypeStruct((mp, c), jnp.float32),
        grid=(mp // tm,),
        in_specs=[pl.BlockSpec((tm, c), lambda i: (i, 0)),
                  pl.BlockSpec((1, c), lambda i: (0, 0)),
                  pl.BlockSpec((1, c), lambda i: (0, 0))],
        out_specs=pl.BlockSpec((tm, c), lambda i: (i, 0)),
        compiler_params=pltpu.CompilerParams(
            dimension_semantics=("parallel",)),
    )(yp, scale.reshape(1, c), shift.reshape(1, c))
    return out[:m]


def pallas_bn_relu(y, scale, shift):
    """relu(y * scale + shift), y:(M,C).  Uses a lane-dense (rows,128) view
    when C < 128 divides 128 (avoids masked partial stores)."""
    m, c = y.shape
    if c % 128 != 0 and 128 % c == 0:
        f = 128 // c
        mp = _round_up(m, f)
        yp = _pad_rows(y, mp)
        y2 = yp.reshape((mp * c) // 128, 128)
        out = _pallas_affine_relu(y2, jnp.tile(scale, f), jnp.tile(shift, f))
        return out.reshape(mp, c)[:m]
    return _pallas_affine_relu(y, scale, shift)


# --------------------------- ConvTranspose2d glue --------------------------- #

def _im2col_deconv_nhwc(x, w, stride, padding, k):
    """General ConvTranspose2d as im2col on NHWC input.

    x: (N,H,W,Cin), w: (Cin,Cout,k,k) (PyTorch layout).
    Returns patches (N*Ho*Wo, k*k*Cin), w_mat (k*k*Cin, Cout), (Ho, Wo).
    """
    n, h, ww, cin = x.shape
    cout = w.shape[1]
    ho = (h - 1) * stride - 2 * padding + k
    wo = (ww - 1) * stride - 2 * padding + k
    hd = (h - 1) * stride + 1
    wd = (ww - 1) * stride + 1
    xd = jnp.zeros((n, hd, wd, cin), x.dtype).at[:, ::stride, ::stride, :].set(x)
    p = k - 1 - padding
    xp = jnp.pad(xd, ((0, 0), (p, p), (p, p), (0, 0)))
    taps = [xp[:, kh:kh + ho, kw:kw + wo, :] for kh in range(k) for kw in range(k)]
    patches = jnp.stack(taps, axis=3).reshape(n * ho * wo, k * k * cin)
    wf = jnp.flip(w, axis=(2, 3))                         # (Cin,Cout,kh,kw)
    w_mat = wf.transpose(2, 3, 0, 1).reshape(k * k * cin, cout)
    return patches, w_mat, (ho, wo)


def _phase_patches(x, w, a, b):
    """Sub-pixel phase (a,b) of ConvTranspose2d(k=4, s=2, p=1) as a dense
    2x2-tap im2col: out[n, 2q+a, 2r+b, :] == patches @ w_mat."""
    n, h, ww, cin = x.shape
    cout = w.shape[1]
    xp = jnp.pad(x, ((0, 0), (1, 1), (1, 1), (0, 0)))
    taps = [xp[:, a + dh:a + dh + h, b + dw:b + dw + ww, :]
            for dh in range(2) for dw in range(2)]
    patches = jnp.stack(taps, axis=3).reshape(n * h * ww, 4 * cin)
    w_sub = jnp.stack([w[:, :, 3 - a - 2 * dh, 3 - b - 2 * dw]
                       for dh in range(2) for dw in range(2)], axis=0)
    w_mat = w_sub.reshape(4 * cin, cout)
    return patches, w_mat


def _interleave_phases(outs, n, h, w, c):
    """outs ordered [(0,0),(0,1),(1,0),(1,1)] each (N,H,W,C) -> (N,2H,2W,C)."""
    g = jnp.stack(outs).reshape(2, 2, n, h, w, c)
    return g.transpose(2, 3, 0, 4, 1, 5).reshape(n, 2 * h, 2 * w, c)


def _bn_scale_shift(s, ss, count, gamma, beta):
    mean = s / count
    var = jnp.maximum(ss / count - mean * mean, 0.0)
    scale = gamma / jnp.sqrt(var + _BN_EPS)
    shift = beta - mean * scale
    return scale, shift


# ------------------------------ Generator model ----------------------------- #

def init_generator_params(key, channels_noise, channels_img, features_g):
    specs = [
        (channels_noise, features_g * 16, 4, 1, 0),
        (features_g * 16, features_g * 8, 4, 2, 1),
        (features_g * 8, features_g * 4, 4, 2, 1),
        (features_g * 4, features_g * 2, 4, 2, 1),
    ]
    blocks = []
    for cin, cout, k, s, p in specs:
        key, wk = jax.random.split(key)
        blocks.append(dict(
            W=0.05 * jax.random.normal(wk, (cin, cout, k, k), jnp.float32),
            gamma=jnp.ones((cout,), jnp.float32),
            beta=jnp.zeros((cout,), jnp.float32),
            stride=s, pad=p, k=k))
    key, wk, bk = jax.random.split(key, 3)
    final = dict(
        W=0.05 * jax.random.normal(wk, (features_g * 2, channels_img, 4, 4),
                                   jnp.float32),
        b=0.05 * jax.random.normal(bk, (channels_img,), jnp.float32),
        stride=2, pad=1, k=4)
    return dict(blocks=blocks, final=final)


def _deconv_bn_relu(x, blk):
    """One Generator block: ConvTranspose2d (no bias) + BatchNorm2d + ReLU. NHWC."""
    W, stride, pad, k = blk["W"], blk["stride"], blk["pad"], blk["k"]
    cout = W.shape[1]
    n, h, w_, _ = x.shape
    xb = x.astype(jnp.bfloat16)

    if stride == 2 and k == 4 and pad == 1:
        ys, s_tot, ss_tot = [], jnp.zeros((cout,), jnp.float32), jnp.zeros((cout,), jnp.float32)
        for a in range(2):
            for b in range(2):
                patches, w_mat = _phase_patches(xb, W, a, b)
                y, s, ss = pallas_matmul_bn(patches, w_mat)
                ys.append(y)
                s_tot += s
                ss_tot += ss
        count = float(n * 2 * h * 2 * w_)
        scale, shift = _bn_scale_shift(s_tot, ss_tot, count, blk["gamma"], blk["beta"])
        outs = [pallas_bn_relu(y, scale, shift).reshape(n, h, w_, cout) for y in ys]
        return _interleave_phases(outs, n, h, w_, cout)

    patches, w_mat, (ho, wo) = _im2col_deconv_nhwc(xb, W, stride, pad, k)
    y, s, ss = pallas_matmul_bn(patches, w_mat)
    scale, shift = _bn_scale_shift(s, ss, float(n * ho * wo), blk["gamma"], blk["beta"])
    y = pallas_bn_relu(y, scale, shift)
    return y.reshape(n, ho, wo, cout)


def _deconv_bias_tanh(x, f):
    """Final layer: ConvTranspose2d (with bias) + tanh, fused in the matmul."""
    W, bias, stride, pad, k = f["W"], f["b"], f["stride"], f["pad"], f["k"]
    cout = W.shape[1]
    n, h, w_, _ = x.shape
    xb = x.astype(jnp.bfloat16)

    if stride == 2 and k == 4 and pad == 1:
        outs = []
        for a in range(2):
            for b in range(2):
                patches, w_mat = _phase_patches(xb, W, a, b)
                y = pallas_matmul_bias_tanh(patches, w_mat, bias)
                outs.append(y.reshape(n, h, w_, cout))
        return _interleave_phases(outs, n, h, w_, cout)

    patches, w_mat, (ho, wo) = _im2col_deconv_nhwc(xb, W, stride, pad, k)
    y = pallas_matmul_bias_tanh(patches, w_mat, bias)
    return y.reshape(n, ho, wo, cout)


def generator_forward(x, params):
    """x: (N, channels_noise, 1, 1) NCHW -> (N, channels_img, 64, 64) NCHW."""
    x = x.transpose(0, 2, 3, 1)                   # NCHW -> NHWC once
    for blk in params["blocks"]:
        x = _deconv_bn_relu(x, blk)
    y = _deconv_bias_tanh(x, params["final"])
    return y.transpose(0, 3, 1, 2)                # NHWC -> NCHW once


def generator_forward_ref(x, params):
    """Pure-JAX f32 reference (plain im2col path) to sanity-check the kernels."""
    x = x.transpose(0, 2, 3, 1).astype(jnp.float32)
    for blk in params["blocks"]:
        n = x.shape[0]
        c = blk["W"].shape[1]
        patches, w_mat, (ho, wo) = _im2col_deconv_nhwc(
            x, blk["W"], blk["stride"], blk["pad"], blk["k"])
        y = patches @ w_mat
        mean = jnp.mean(y, axis=0, keepdims=True)
        var = jnp.mean((y - mean) ** 2, axis=0, keepdims=True)
        y = (y - mean) / jnp.sqrt(var + _BN_EPS) * blk["gamma"] + blk["beta"]
        y = jnp.maximum(y, 0.0)
        x = y.reshape(n, ho, wo, c)
    f = params["final"]
    n = x.shape[0]
    c = f["W"].shape[1]
    patches, w_mat, (ho, wo) = _im2col_deconv_nhwc(
        x, f["W"], f["stride"], f["pad"], f["k"])
    y = jnp.tanh(patches @ w_mat + f["b"].reshape(1, c))
    return y.reshape(n, ho, wo, c).transpose(0, 3, 1, 2)


# ----------------------------------- main ----------------------------------- #

if __name__ == "__main__":
    key = jax.random.PRNGKey(0)
    batch = 2
    channels_noise = 8
    channels_img = 3
    features_g = 4

    pkey, xkey = jax.random.split(key)
    params = init_generator_params(pkey, channels_noise, channels_img, features_g)
    x = jax.random.normal(xkey, (batch, channels_noise, 1, 1), jnp.float32)

    out = jax.block_until_ready(generator_forward(x, params))
    assert out.shape == (batch, channels_img, 64, 64), out.shape

    ref = jax.block_until_ready(generator_forward_ref(x, params))
    assert bool(jnp.all(jnp.isfinite(out)))
    err = float(jnp.max(jnp.abs(out - ref)))
    assert err < 5e-2, err

    print("KERNEL_OK")
</pallas_src>

<mosaic_0001>
module attributes {stable_mosaic.version = 11 : i64} {
  func.func @_mm_bn_kernel(%arg0: i32, %arg1: i32, %arg2: memref<32x128xbf16, #tpu.memory_space<vmem>>, %arg3: memref<128x64xbf16, #tpu.memory_space<vmem>>, %arg4: memref<32x64xf32, #tpu.memory_space<vmem>>, %arg5: memref<1x1x64xf32, #tpu.memory_space<vmem>>, %arg6: memref<1x1x64xf32, #tpu.memory_space<vmem>>, %arg7: memref<32x64xf32, #tpu.memory_space<vmem>>) attributes {dimension_semantics = [#tpu.dimension_semantics<parallel>, #tpu.dimension_semantics<arbitrary>], iteration_bounds = array<i64: 1, 1>, scalar_prefetch = 0 : i64, scratch_operands = 1 : i64, tpu.core_type = #tpu.core_type<tc>, window_params = [{transform_indices = @transform_0, window_bounds = array<i64: 32, 128>}, {transform_indices = @transform_1, window_bounds = array<i64: 128, 64>}, {transform_indices = @transform_2, window_bounds = array<i64: 32, 64>}, {transform_indices = @transform_3, window_bounds = array<i64: 1, 1, 64>}, {transform_indices = @transform_4, window_bounds = array<i64: 1, 1, 64>}]} {
    %c0_i32 = arith.constant 0 : i32
    %0 = arith.cmpi eq, %arg1, %c0_i32 : i32
    %1 = arith.extui %0 : i1 to i32
    %c0_i32_0 = arith.constant 0 : i32
    %2 = arith.cmpi ne, %1, %c0_i32_0 : i32
    scf.if %2 {
      %cst_10 = arith.constant 0.000000e+00 : f32
      %12 = vector.broadcast %cst_10 : f32 to vector<32x64xf32>
      %c0_11 = arith.constant 0 : index
      %c0_12 = arith.constant 0 : index
      %13 = vector.load %arg7[%c0_11, %c0_12] : memref<32x64xf32, #tpu.memory_space<vmem>>, vector<32x64xf32>
      tpu.vector_store %arg7[%c0_11, %c0_12], %12 {strides = array<i32>} : memref<32x64xf32, #tpu.memory_space<vmem>>, vector<32x64xf32>,
    } else {
    }
    %c0 = arith.constant 0 : index
    %c0_1 = arith.constant 0 : index
    %3 = vector.load %arg7[%c0, %c0_1] : memref<32x64xf32, #tpu.memory_space<vmem>>, vector<32x64xf32>
    %c0_2 = arith.constant 0 : index
    %c0_3 = arith.constant 0 : index
    %4 = vector.load %arg2[%c0_2, %c0_3] : memref<32x128xbf16, #tpu.memory_space<vmem>>, vector<32x128xbf16>
    %c0_4 = arith.constant 0 : index
    %c0_5 = arith.constant 0 : index
    %5 = vector.load %arg3[%c0_4, %c0_5] : memref<128x64xbf16, #tpu.memory_space<vmem>>, vector<128x64xbf16>
    %cst = arith.constant dense<0.000000e+00> : vector<32x64xf32>
    %6 = tpu.matmul %4, %5, %cst {dimension_numbers = #tpu.dot_dimension_numbers<[1], [0], [0], [1], [0, 0, 1, 1], [], []>} : vector<32x128xbf16>, vector<128x64xbf16>, vector<32x64xf32> -> vector<32x64xf32>
    %7 = arith.addf %3, %6 : vector<32x64xf32>
    %c0_6 = arith.constant 0 : index
    %c0_7 = arith.constant 0 : index
    %8 = vector.load %arg7[%c0_6, %c0_7] : memref<32x64xf32, #tpu.memory_space<vmem>>, vector<32x64xf32>
    tpu.vector_store %arg7[%c0_6, %c0_7], %7 {strides = array<i32>} : memref<32x64xf32, #tpu.memory_space<vmem>>, vector<32x64xf32>,
    %c0_i32_8 = arith.constant 0 : i32
    %9 = arith.cmpi eq, %arg1, %c0_i32_8 : i32
    %10 = arith.extui %9 : i1 to i32
    %c0_i32_9 = arith.constant 0 : i32
    %11 = arith.cmpi ne, %10, %c0_i32_9 : i32
    scf.if %11 {
      %c0_10 = arith.constant 0 : index
      %c0_11 = arith.constant 0 : index
      %12 = vector.load %arg7[%c0_10, %c0_11] : memref<32x64xf32, #tpu.memory_space<vmem>>, vector<32x64xf32>
      %c0_12 = arith.constant 0 : index
      %c0_13 = arith.constant 0 : index
      %13 = vector.load %arg4[%c0_12, %c0_13] : memref<32x64xf32, #tpu.memory_space<vmem>>, vector<32x64xf32>
      tpu.vector_store %arg4[%c0_12, %c0_13], %12 {strides = array<i32>} : memref<32x64xf32, #tpu.memory_space<vmem>>, vector<32x64xf32>,
      %cst_14 = arith.constant dense<0.000000e+00> : vector<64xf32>
      %14 = vector.multi_reduction <add>, %12, %cst_14 [0] : vector<32x64xf32> to vector<64xf32>
      %15 = vector.shape_cast %14 : vector<64xf32> to vector<1x64xf32>
      %16 = vector.shape_cast %15 : vector<1x64xf32> to vector<1x1x64xf32>
      %c0_15 = arith.constant 0 : index
      %c0_16 = arith.constant 0 : index
      %c0_17 = arith.constant 0 : index
      %17 = vector.load %arg5[%c0_15, %c0_16, %c0_17] : memref<1x1x64xf32, #tpu.memory_space<vmem>>, vector<1x1x64xf32>
      tpu.vector_store %arg5[%c0_15, %c0_16, %c0_17], %16 {strides = array<i32>} : memref<1x1x64xf32, #tpu.memory_space<vmem>>, vector<1x1x64xf32>,
      %18 = arith.mulf %12, %12 : vector<32x64xf32>
      %cst_18 = arith.constant dense<0.000000e+00> : vector<64xf32>
      %19 = vector.multi_reduction <add>, %18, %cst_18 [0] : vector<32x64xf32> to vector<64xf32>
      %20 = vector.shape_cast %19 : vector<64xf32> to vector<1x64xf32>
      %21 = vector.shape_cast %20 : vector<1x64xf32> to vector<1x1x64xf32>
      %c0_19 = arith.constant 0 : index
      %c0_20 = arith.constant 0 : index
      %c0_21 = arith.constant 0 : index
      %22 = vector.load %arg6[%c0_19, %c0_20, %c0_21] : memref<1x1x64xf32, #tpu.memory_space<vmem>>, vector<1x1x64xf32>
      tpu.vector_store %arg6[%c0_19, %c0_20, %c0_21], %21 {strides = array<i32>} : memref<1x1x64xf32, #tpu.memory_space<vmem>>, vector<1x1x64xf32>,
    } else {
    }
    return
  }
  func.func @transform_0(%arg0: i32, %arg1: i32) -> (i32, i32) {
    %c0_i32 = arith.constant 0 : i32
    return %arg0, %arg1 : i32, i32
  }
  func.func @transform_1(%arg0: i32, %arg1: i32) -> (i32, i32) {
    %c0_i32 = arith.constant 0 : i32
    %c0_i32_0 = arith.constant 0 : i32
    return %arg1, %c0_i32 : i32, i32
  }
  func.func @transform_2(%arg0: i32, %arg1: i32) -> (i32, i32) {
    %c0_i32 = arith.constant 0 : i32
    %c0_i32_0 = arith.constant 0 : i32
    return %arg0, %c0_i32 : i32, i32
  }
  func.func @transform_3(%arg0: i32, %arg1: i32) -> (i32, i32, i32) {
    %c0_i32 = arith.constant 0 : i32
    %c0_i32_0 = arith.constant 0 : i32
    %c0_i32_1 = arith.constant 0 : i32
    return %arg0, %c0_i32, %c0_i32_0 : i32, i32, i32
  }
  func.func @transform_4(%arg0: i32, %arg1: i32) -> (i32, i32, i32) {
    %c0_i32 = arith.constant 0 : i32
    %c0_i32_0 = arith.constant 0 : i32
    %c0_i32_1 = arith.constant 0 : i32
    return %arg0, %c0_i32, %c0_i32_0 : i32, i32, i32
  }
}

</mosaic_0001>

<bundles_post_ra>
// kernel: tpu_custom_call.1
= control target key start
LH: loop header
LB: loop body
LE: loop exit
PB: predicated region body
PF: predicated region fallthrough
CT: control target
= control target key end

     0   :  { %10 = vsyncpa [#allocation4], 0  ;;  %vm21_vm0 = vcmask 523264   ;;  %v381_v2 = vmov 0.0   ;;  %s515_s0 = inlined_call_operand.vmem [shape: bf16[32,128], index: 0, kind: input, shape index: {}]   ;;  %s516_s1 = inlined_call_operand.vmem [shape: bf16[128,64], index: 1, kind: input, shape index: {}]   ;;  %s517_s2 = inlined_call_operand.hbm [shape: f32[32,64], index: 2, kind: output, shape index: {0}]   ;;  %s518_s3 = inlined_call_operand.hbm [shape: f32[1,1,64], index: 3, kind: output, shape index: {1}]   ;;  %s519_s4 = inlined_call_operand.hbm [shape: f32[1,1,64], index: 4, kind: output, shape index: {2}]  }
   0x1   :  { %v301_v0 = vld [vmem:[%s516_s1] sm:$0xff]   ;;  %v302_v1 = vld [vmem:[%s516_s1 + $0x8] sm:$0xff]   ;;  %24 = vst.msk [vmem:[#allocation2 + $0x10] sm:$0xff] %vm21_vm0, %v381_v2  ;;  %22 = vst.msk [vmem:[#allocation2] sm:$0xff] %vm21_vm0, %v381_v2 }
   0x2   :  { %275 = vmatprep.subr.bf16.mxu0 %v301_v0  ;;  %23 = vst.msk [vmem:[#allocation2 + $0x8] sm:$0xff] %vm21_vm0, %v381_v2  ;;  %25 = vst.msk [vmem:[#allocation2 + $0x18] sm:$0xff] %vm21_vm0, %v381_v2  ;;  %v303_v3 = vld [vmem:[%s516_s1 + $0x10] sm:$0xff]   ;;  %v304_v4 = vld [vmem:[%s516_s1 + $0x18] sm:$0xff]  }
   0x3   :  { %276 = vmatpush3.bf16.msra.mxu0 %v301_v0  ;;  %v309_v5 = vld [vmem:[%s515_s0] sm:$0xff]  }
   0x4   :  { %277 = vmatprep.subr.bf16.mxu0 %v302_v1  ;;  %291 = vmatprep.mubr.bf16.mxu0 %v309_v5 }
   0x7   :  { %278 = vmatpush3.bf16.msra.mxu0 %v302_v1 }
   0x8   :  { %279 = vmatprep.subr.bf16.mxu0 %v303_v3 }
   0x9   :  { %11 = vsyncpa [#allocation6], 0  ;;  %v305_v6 = vld [vmem:[%s516_s1 + $0x20] sm:$0xff]   ;;  %v306_v7 = vld [vmem:[%s516_s1 + $0x28] sm:$0xff]  }
   0xa   :  { %v307_v8 = vld [vmem:[%s516_s1 + $0x30] sm:$0xff]   ;;  %v308_v9 = vld [vmem:[%s516_s1 + $0x38] sm:$0xff]   ;;  %v310_v10 = vld [vmem:[%s515_s0 + $0x8] sm:$0xff]   ;;  %s382_s0 = smov [#allocation3]  }
   0xb   :  { %280 = vmatpush3.bf16.msra.mxu0 %v303_v3  ;;  %v28_v11 = vld [vmem:[#allocation2 + $0x10] sm:$0xff]  ;;  %v26_v12 = vld [vmem:[#allocation2] sm:$0xff]  ;;  %v29_v14 = vld [vmem:[#allocation2 + $0x18] sm:$0xff]  ;;  %s217_s1 = sshll.u32 %s382_s0, 4  ;;  %s451_s1 = int_to_ptr.vmem [resolvable:$true] %s217_s1 }
   0xc   :  { %281 = vmatprep.subr.bf16.mxu0 %v304_v4  ;;  %v27_v17 = vld [vmem:[#allocation2 + $0x8] sm:$0xff]  ;;  %s311_s9 = scalar_lea.vmem %s451_s1, 512  ;;  %p316_p1 = scmp.lt.s32.totalorder %s451_s1, %s451_s1 }
   0xd   :  { %p312_p0 = scmp.ne.s32.totalorder %s451_s1, %s311_s9  ;;  %p317_p2 = scmp.lt.s32.totalorder %s311_s9, %s311_s9 }
   0xf   :  { %282 = vmatpush3.bf16.msra.mxu0 %v304_v4  ;;  %p318_p3 = por %p317_p2, %p316_p1 }
  0x10   :  { %283 = vmatprep.subr.bf16.mxu0 %v305_v6 }
  0x11   :  { %p319_p4 = pnand %p318_p3, %p312_p0 }
  0x13   :  { %284 = vmatpush3.bf16.msra.mxu0 %v305_v6 }
  0x14   :  { %285 = vmatprep.subr.bf16.mxu0 %v306_v7 }
  0x17   :  { %286 = vmatpush3.bf16.msra.mxu0 %v306_v7 }
  0x18   :  { %287 = vmatprep.subr.bf16.mxu0 %v307_v8 }
  0x1b   :  { %288 = vmatpush3.bf16.msra.mxu0 %v307_v8 }
  0x1c   :  { %289 = vmatprep.subr.bf16.mxu0 %v308_v9 }
  0x1f   :  { %290 = vmatpush3.bf16.msra.mxu0 %v308_v9 }
  0x22   :  { %292 = vmatmul.mubr.bf16.vlgmr.msra.gmra.mrb[0].mxu0 %v310_v10 }
  0xf5   :  { %v293_v13 = vpop.f32.mrb[0].mxu0 }
  0xf6   :  { %v161_v15 = vadd.f32 %v293_v13, %v28_v11  ;;  %v144_v16 = vpop.f32.mrb[1].mxu0 }
  0xf7   :  { %v159_v18 = vadd.f32 %v144_v16, %v26_v12  ;;  %v294_v19 = vpop.f32.mrb[2].mxu0 }
  0xf8   :  { %166 = vst.msk [vmem:[#allocation2 + $0x10] sm:$0xff] %vm21_vm0, %v161_v15  ;;  %v162_v20 = vadd.f32 %v294_v19, %v29_v14  ;;  %v147_v21 = vpop.f32.mrb[3].mxu0 }
  0xf9   :  { %164 = vst.msk [vmem:[#allocation2] sm:$0xff] %vm21_vm0, %v159_v18  ;;  %v160_v22 = vadd.f32 %v147_v21, %v27_v17 }
  0xfa   :  { %167 = vst.msk [vmem:[#allocation2 + $0x18] sm:$0xff] %vm21_vm0, %v162_v20 }
  0xfb   :  { %165 = vst.msk [vmem:[#allocation2 + $0x8] sm:$0xff] %vm21_vm0, %v160_v22 }
  0xff   :  { %v173_v23 = vld [vmem:[#allocation2 + $0x10] sm:$0xff] }
 0x100   :  { %v171_v24 = vld [vmem:[#allocation2] sm:$0xff]  ;;  %177 = vst.msk [vmem:[#allocation3 + $0x10] sm:$0xff] %vm21_vm0, %v173_v23  ;;  %v196_v31 = vmul.f32 %v173_v23, %v173_v23 }
 0x101   :  { %v174_v25 = vld [vmem:[#allocation2 + $0x18] sm:$0xff]  ;;  %175 = vst.msk [vmem:[#allocation3] sm:$0xff] %vm21_vm0, %v171_v24  ;;  %v194_v26 = vmul.f32 %v171_v24, %v171_v24  ;;  %v179_v28 = vsel %vm21_vm0, %v171_v24, 0.0 }
 0x102   :  { %v172_v27 = vld [vmem:[#allocation2 + $0x8] sm:$0xff]  ;;  %178 = vst.msk [vmem:[#allocation3 + $0x18] sm:$0xff] %vm21_vm0, %v174_v25 }
 0x103   :  { %v180_v29 = vsel %vm21_vm0, %v172_v27, 0.0  ;;  %176 = vst.msk [vmem:[#allocation3 + $0x8] sm:$0xff] %vm21_vm0, %v172_v27  ;;  %v195_v30 = vmul.f32 %v172_v27, %v172_v27 }
 0x104   :  { %v181_v32 = vadd.f32 %v180_v29, %v179_v28 }
 0x105   :  { %322 = shalt.err (!%p319_p4)
}
 0x106   :  { %s323_s12 = scalar_lea.hbm %s517_s2, 512 }
 0x107   :  { %p324_p5 = scmp.ne.s32.totalorder %s517_s2, %s323_s12  ;;  %p327_p6 = scmp.lt.u32.totalorder %s323_s12, %s517_s2 }
 0x109   :  { %p329_p7 = pnand %p327_p6, %p324_p5 }
 0x10b   :  { %332 = shalt.err (!%p329_p7)
}
 0x10c   :  { %s383_s17 = smov 128   ;;  %s384_s18 = smov 8   ;;  %v182_v33 = vsel %vm21_vm0, %v173_v23, 0.0  ;;  %v197_v34 = vmul.f32 %v174_v25, %v174_v25  ;;  %v198_v35 = vsel %vm21_vm0, %v194_v26, 0.0  ;;  %v199_v36 = vsel %vm21_vm0, %v195_v30, 0.0 }
 0x10d   :  { %223 = dma.vmem_to_hbm [thread:$0]  %s451_s1, 512, %s517_s2, [#allocation4], %s383_s17, %s383_s17, %s384_s18   ;;  %v183_v37 = vadd.f32 %v182_v33, %v181_v32  ;;  %v200_v38 = vadd.f32 %v199_v36, %v198_v35  ;;  %v184_v39 = vsel %vm21_vm0, %v174_v25, 0.0  ;;  %v201_v40 = vsel %vm21_vm0, %v196_v31, 0.0 }
 0x10e   :  { %v203_v43 = vsel %vm21_vm0, %v197_v34, 0.0  ;;  %s385_s2 = smov [#allocation5]   ;;  %vm192_vm1 = vcmask 516096   ;;  %s386_s22 = smov [#allocation7]  }
 0x10f   :  { %v185_v41 = vadd.f32 %v184_v39, %v183_v37  ;;  %v202_v42 = vadd.f32 %v201_v40, %v200_v38  ;;  %s230_s21 = sshll.u32 %s385_s2, 4  ;;  %s240_s23 = sshll.u32 %s386_s22, 4  ;;  %s231_s21 = int_to_ptr.vmem [resolvable:$true] %s230_s21  ;;  %s482_s23 = int_to_ptr.vmem [resolvable:$true] %s240_s23 }
 0x110   :  { %s333_s24 = scalar_lea.vmem %s231_s21, 16  ;;  %s337_s25 = scalar_lea.vmem %s231_s21, 32 }
 0x111   :  { %v186_v44 = vrot.slane %v185_v41, 4  ;;  %v204_v45 = vadd.f32 %v203_v43, %v202_v42  ;;  %p334_p8 = scmp.ne.s32.totalorder %s231_s21, %s333_s24  ;;  %p338_p9 = scmp.lt.s32.totalorder %s231_s21, %s231_s21 }
 0x112   :  { %p339_p10 = scmp.lt.s32.totalorder %s337_s25, %s333_s24 }
 0x113   :  { %v187_v46 = vadd.f32 %v186_v44, %v185_v41  ;;  %v205_v47 = vrot.slane %v204_v45, 4 }
 0x114   :  { %p340_p11 = por %p339_p10, %p338_p9 }
 0x115   :  { %v188_v48 = vrot.slane %v187_v46, 2  ;;  %v206_v49 = vadd.f32 %v205_v47, %v204_v45 }
 0x116   :  { %p341_p12 = pnand %p340_p11, %p334_p8 }
 0x117   :  { %v189_v50 = vadd.f32 %v188_v48, %v187_v46  ;;  %v207_v51 = vrot.slane %v206_v49, 2 }
 0x119   :  { %v190_v52 = vrot.slane %v189_v50, 1  ;;  %v208_v53 = vadd.f32 %v207_v51, %v206_v49 }
 0x11b   :  { %v191_v54 = vadd.f32 %v190_v52, %v189_v50  ;;  %v209_v55 = vrot.slane %v208_v53, 1 }
 0x11d   :  { %193 = vst.msk [vmem:[#allocation5] sm:$0x1] %vm192_vm1, %v191_v54  ;;  %v210_v56 = vadd.f32 %v209_v55, %v208_v53 }
 0x11e   :  { %344 = shalt.err (!%p341_p12)
}
 0x11f   :  { %s345_s28 = scalar_lea.hbm %s518_s3, 16 }
 0x120   :  { %p346_p13 = scmp.ne.s32.totalorder %s518_s3, %s345_s28  ;;  %p349_p0 = scmp.lt.u32.totalorder %s345_s28, %s518_s3 }
 0x122   :  { %p351_p1 = pnand %p349_p0, %p346_p13 }
 0x124   :  { %354 = shalt.err (!%p351_p1)
}
 0x125   :  { %233 = dma.vmem_to_hbm [thread:$0]  %s231_s21, 16, %s518_s3, [#allocation6]   ;;  %211 = vst.msk [vmem:[#allocation7] sm:$0x1] %vm192_vm1, %v210_v56 }
 0x126   :  { %s355_s0 = scalar_lea.vmem %s482_s23, 16  ;;  %s359_s1 = scalar_lea.vmem %s482_s23, 32 }
 0x127   :  { %p356_p2 = scmp.ne.s32.totalorder %s482_s23, %s355_s0  ;;  %p360_p3 = scmp.lt.s32.totalorder %s482_s23, %s482_s23 }
 0x128   :  { %p361_p4 = scmp.lt.s32.totalorder %s359_s1, %s355_s0 }
 0x12a   :  { %p362_p5 = por %p361_p4, %p360_p3 }
 0x12c   :  { %p363_p6 = pnand %p362_p5, %p356_p2 }
 0x12e   :  { %366 = shalt.err (!%p363_p6)
}
 0x12f   :  { %s367_s11 = scalar_lea.hbm %s519_s4, 16 }
 0x130   :  { %p368_p7 = scmp.ne.s32.totalorder %s519_s4, %s367_s11  ;;  %p371_p8 = scmp.lt.u32.totalorder %s367_s11, %s519_s4 }
 0x132   :  { %p373_p9 = pnand %p371_p8, %p368_p7 }
 0x134   :  { %376 = shalt.err (!%p373_p9)
}
 0x135   :  { %243 = dma.vmem_to_hbm [thread:$0]  %s482_s23, 16, %s519_s4, [#allocation6]  }
 0x136   :  { %377 = dma.done.wait [#allocation4], 512  }
 0x137   :  { %378 = vsyncadd [#allocation4], 4294966784 }
 0x138   :  { %379 = dma.done.wait [#allocation6], 32  }
 0x139   :  { %380 = vsyncadd [#allocation6], 4294967264 }
 0x13a   :  { %253 = vsyncpa [#allocation4], 1 }
 0x13b   :  { %254 = vsyncpa [#allocation6], 1 }

</bundles_post_ra>
